<compile_context>
chip_gen: v7x
topology: tpu7x:2x2x1
jax: 0.10.0
libtpu: 0.0.40
codegen_flags: <defaults>
</compile_context>

<pallas_src>
import math
import jax
import jax.numpy as jnp
from jax.experimental import pallas as pl
from jax.experimental.pallas import tpu as pltpu


def _geglu_kernel(x_ref, w_ref, b_ref, o_ref, acc_ref):
    k = pl.program_id(2)

    @pl.when(k == 0)
    def _():
        acc_ref[...] = jnp.zeros_like(acc_ref)

    # One wide MXU push: (block_m, block_k) @ (block_k, 2*block_n).
    acc_ref[...] += jnp.dot(x_ref[...], w_ref[0],
                            preferred_element_type=jnp.float32)

    @pl.when(k == pl.num_programs(2) - 1)
    def _():
        bn = o_ref.shape[1]
        acc = acc_ref[...] + b_ref[0]          # (block_m, 2*bn) + (1, 2*bn)
        h = acc[:, :bn]                        # value half
        g = acc[:, bn:]                        # gate half
        # exact (erf) GELU in f32 (matches F.gelu default; f32 is safe on v5e)
        gelu_g = 0.5 * g * (1.0 + jax.lax.erf(g * (1.0 / math.sqrt(2.0))))
        o_ref[...] = (h * gelu_g).astype(o_ref.dtype)


def _round_up(x, m):
    return ((x + m - 1) // m) * m


def geglu(x, w, b, *, block_m=256, block_n=256, block_k=512):
    """GEGLU forward.

    x: (..., dim_in)
    w: (dim_in, 2*dim_out)   (transposed from PyTorch's (2*dim_out, dim_in))
    b: (2*dim_out,)
    returns: (..., dim_out)
    """
    orig_shape = x.shape
    dim_in = orig_shape[-1]
    dim_out = w.shape[1] // 2
    dtype = x.dtype

    x2d = x.reshape(-1, dim_in)
    m = x2d.shape[0]

    # Adapt tile sizes to the problem; keep lane dims 128-granular and the
    # sublane (M) dim 16-granular so f32 and bf16 inputs both tile natively.
    block_m = min(block_m, _round_up(m, 16))
    block_k = min(block_k, _round_up(dim_in, 128))
    block_n = min(block_n, _round_up(dim_out, 128))

    m_p = _round_up(m, block_m)
    k_p = _round_up(dim_in, block_k)
    n_p = _round_up(dim_out, block_n)
    n_blocks = n_p // block_n

    # Pad activations (zeros in padded K columns contribute 0 to the dot).
    x_pad = jnp.pad(x2d, ((0, m_p - m), (0, k_p - dim_in)))

    # Pack the value / gate column blocks of W side by side so the kernel does
    # a single fused dot per step: w_packed[j] = [W_x block j | W_g block j].
    w_x = jnp.pad(w[:, :dim_out], ((0, k_p - dim_in), (0, n_p - dim_out)))
    w_g = jnp.pad(w[:, dim_out:], ((0, k_p - dim_in), (0, n_p - dim_out)))
    w_x = w_x.reshape(k_p, n_blocks, block_n).transpose(1, 0, 2)
    w_g = w_g.reshape(k_p, n_blocks, block_n).transpose(1, 0, 2)
    w_packed = jnp.concatenate([w_x, w_g], axis=-1)      # (n_blocks, k_p, 2*bn)

    b_x = jnp.pad(b[:dim_out], (0, n_p - dim_out)).reshape(n_blocks, 1, block_n)
    b_g = jnp.pad(b[dim_out:], (0, n_p - dim_out)).reshape(n_blocks, 1, block_n)
    b_packed = jnp.concatenate([b_x, b_g], axis=-1)      # (n_blocks, 1, 2*bn)

    grid = (m_p // block_m, n_blocks, k_p // block_k)

    itemsize = jnp.dtype(dtype).itemsize
    cost = pl.CostEstimate(
        flops=2 * m * dim_in * 2 * dim_out,
        transcendentals=m * dim_out,
        bytes_accessed=(x2d.size + w.size + b.size + m * dim_out) * itemsize,
    )

    out = pl.pallas_call(
        _geglu_kernel,
        out_shape=jax.ShapeDtypeStruct((m_p, n_p), dtype),
        grid_spec=pltpu.PrefetchScalarGridSpec(
            num_scalar_prefetch=0,
            grid=grid,
            in_specs=[
                pl.BlockSpec((block_m, block_k), lambda i, j, k: (i, k)),
                pl.BlockSpec((1, block_k, 2 * block_n), lambda i, j, k: (j, k, 0)),
                pl.BlockSpec((1, 1, 2 * block_n), lambda i, j, k: (j, 0, 0)),
            ],
            out_specs=pl.BlockSpec((block_m, block_n), lambda i, j, k: (i, j)),
            scratch_shapes=[pltpu.VMEM((block_m, 2 * block_n), jnp.float32)],
        ),
        compiler_params=pltpu.CompilerParams(
            dimension_semantics=("parallel", "parallel", "arbitrary"),
            vmem_limit_bytes=64 * 1024 * 1024,
        ),
        cost_estimate=cost,
    )(x_pad, w_packed, b_packed)

    return out[:m, :dim_out].reshape(*orig_shape[:-1], dim_out)


def _reference(x, w, b):
    dim_out = w.shape[1] // 2
    proj = x @ w + b
    val, gate = proj[..., :dim_out], proj[..., dim_out:]
    return val * jax.nn.gelu(gate, approximate=False)


if __name__ == "__main__":
    key = jax.random.PRNGKey(0)

    def make_case(key, batch, seq, dim_in, dim_out):
        kx, kw, kb = jax.random.split(key, 3)
        x = jax.random.normal(kx, (batch, seq, dim_in), dtype=jnp.float32)
        bound = 1.0 / math.sqrt(dim_in)
        w = jax.random.uniform(kw, (dim_in, 2 * dim_out), dtype=jnp.float32,
                               minval=-bound, maxval=bound)
        b = jax.random.uniform(kb, (2 * dim_out,), dtype=jnp.float32,
                               minval=-bound, maxval=bound)
        return x, w, b

    k1, k2 = jax.random.split(key)

    # Case 1: small shapes consistent with the module.
    x, w, b = make_case(k1, batch=2, seq=8, dim_in=32, dim_out=32)
    out = geglu(x, w, b)
    jax.block_until_ready(out)
    ref = _reference(x, w, b)
    assert out.shape == ref.shape
    assert jnp.allclose(out, ref, atol=1e-5, rtol=1e-5), "case 1 mismatch"

    # Case 2: non-tile-aligned shapes to exercise padding in M, K and N.
    x, w, b = make_case(k2, batch=3, seq=7, dim_in=48, dim_out=80)
    out = geglu(x, w, b)
    jax.block_until_ready(out)
    ref = _reference(x, w, b)
    assert out.shape == ref.shape
    assert jnp.allclose(out, ref, atol=1e-5, rtol=1e-5), "case 2 mismatch"

    print("KERNEL_OK")
</pallas_src>

<mosaic_0001>
module attributes {stable_mosaic.version = 11 : i64} {
  func.func @_geglu_kernel(%arg0: i32, %arg1: i32, %arg2: i32, %arg3: memref<16x128xf32, #tpu.memory_space<vmem>>, %arg4: memref<1x128x256xf32, #tpu.memory_space<vmem>>, %arg5: memref<1x1x256xf32, #tpu.memory_space<vmem>>, %arg6: memref<16x128xf32, #tpu.memory_space<vmem>>, %arg7: memref<16x256xf32, #tpu.memory_space<vmem>>) attributes {dimension_semantics = [#tpu.dimension_semantics<parallel>, #tpu.dimension_semantics<parallel>, #tpu.dimension_semantics<arbitrary>], iteration_bounds = array<i64: 1, 1, 1>, scalar_prefetch = 0 : i64, scratch_operands = 1 : i64, tpu.core_type = #tpu.core_type<tc>, window_params = [{transform_indices = @transform_0, window_bounds = array<i64: 16, 128>}, {transform_indices = @transform_1, window_bounds = array<i64: 1, 128, 256>}, {transform_indices = @transform_2, window_bounds = array<i64: 1, 1, 256>}, {transform_indices = @transform_3, window_bounds = array<i64: 16, 128>}]} {
    %c0_i32 = arith.constant 0 : i32
    %0 = arith.cmpi eq, %arg2, %c0_i32 : i32
    %1 = arith.extui %0 : i1 to i32
    %c0_i32_0 = arith.constant 0 : i32
    %2 = arith.cmpi ne, %1, %c0_i32_0 : i32
    scf.if %2 {
      %cst_11 = arith.constant 0.000000e+00 : f32
      %13 = vector.broadcast %cst_11 : f32 to vector<16x256xf32>
      %c0_12 = arith.constant 0 : index
      %c0_13 = arith.constant 0 : index
      %14 = vector.load %arg7[%c0_12, %c0_13] : memref<16x256xf32, #tpu.memory_space<vmem>>, vector<16x256xf32>
      tpu.vector_store %arg7[%c0_12, %c0_13], %13 {strides = array<i32>} : memref<16x256xf32, #tpu.memory_space<vmem>>, vector<16x256xf32>,
    } else {
    }
    %c0 = arith.constant 0 : index
    %c0_1 = arith.constant 0 : index
    %3 = vector.load %arg7[%c0, %c0_1] : memref<16x256xf32, #tpu.memory_space<vmem>>, vector<16x256xf32>
    %c0_2 = arith.constant 0 : index
    %c0_3 = arith.constant 0 : index
    %4 = vector.load %arg3[%c0_2, %c0_3] : memref<16x128xf32, #tpu.memory_space<vmem>>, vector<16x128xf32>
    %c0_4 = arith.constant 0 : index
    %c0_5 = arith.constant 0 : index
    %c0_6 = arith.constant 0 : index
    %5 = vector.load %arg4[%c0_4, %c0_5, %c0_6] : memref<1x128x256xf32, #tpu.memory_space<vmem>>, vector<1x128x256xf32>
    %6 = vector.shape_cast %5 : vector<1x128x256xf32> to vector<128x256xf32>
    %cst = arith.constant dense<0.000000e+00> : vector<16x256xf32>
    %7 = tpu.matmul %4, %6, %cst {dimension_numbers = #tpu.dot_dimension_numbers<[1], [0], [0], [1], [0, 0, 1, 1], [], []>} : vector<16x128xf32>, vector<128x256xf32>, vector<16x256xf32> -> vector<16x256xf32>
    %8 = arith.addf %3, %7 : vector<16x256xf32>
    %c0_7 = arith.constant 0 : index
    %c0_8 = arith.constant 0 : index
    %9 = vector.load %arg7[%c0_7, %c0_8] : memref<16x256xf32, #tpu.memory_space<vmem>>, vector<16x256xf32>
    tpu.vector_store %arg7[%c0_7, %c0_8], %8 {strides = array<i32>} : memref<16x256xf32, #tpu.memory_space<vmem>>, vector<16x256xf32>,
    %c0_i32_9 = arith.constant 0 : i32
    %10 = arith.cmpi eq, %arg2, %c0_i32_9 : i32
    %11 = arith.extui %10 : i1 to i32
    %c0_i32_10 = arith.constant 0 : i32
    %12 = arith.cmpi ne, %11, %c0_i32_10 : i32
    scf.if %12 {
      %c0_11 = arith.constant 0 : index
      %c0_12 = arith.constant 0 : index
      %13 = vector.load %arg7[%c0_11, %c0_12] : memref<16x256xf32, #tpu.memory_space<vmem>>, vector<16x256xf32>
      %c0_13 = arith.constant 0 : index
      %c0_14 = arith.constant 0 : index
      %c0_15 = arith.constant 0 : index
      %14 = vector.load %arg5[%c0_13, %c0_14, %c0_15] : memref<1x1x256xf32, #tpu.memory_space<vmem>>, vector<1x1x256xf32>
      %15 = vector.shape_cast %14 : vector<1x1x256xf32> to vector<1x256xf32>
      %16 = vector.broadcast %15 : vector<1x256xf32> to vector<16x256xf32>
      %17 = arith.addf %13, %16 : vector<16x256xf32>
      %18 = vector.extract_strided_slice %17 {offsets = [0, 0], sizes = [16, 128], strides = [1, 1]} : vector<16x256xf32> to vector<16x128xf32>
      %19 = vector.extract_strided_slice %17 {offsets = [0, 128], sizes = [16, 128], strides = [1, 1]} : vector<16x256xf32> to vector<16x128xf32>
      %cst_16 = arith.constant 5.000000e-01 : f32
      %20 = vector.broadcast %cst_16 : f32 to vector<16x128xf32>
      %21 = arith.mulf %20, %19 : vector<16x128xf32>
      %cst_17 = arith.constant 0.707106769 : f32
      %22 = vector.broadcast %cst_17 : f32 to vector<16x128xf32>
      %23 = arith.mulf %19, %22 : vector<16x128xf32>
      %24 = math.erf %23 : vector<16x128xf32>
      %cst_18 = arith.constant 1.000000e+00 : f32
      %25 = vector.broadcast %cst_18 : f32 to vector<16x128xf32>
      %26 = arith.addf %25, %24 : vector<16x128xf32>
      %27 = arith.mulf %21, %26 : vector<16x128xf32>
      %28 = arith.mulf %18, %27 : vector<16x128xf32>
      %c0_19 = arith.constant 0 : index
      %c0_20 = arith.constant 0 : index
      %29 = vector.load %arg6[%c0_19, %c0_20] : memref<16x128xf32, #tpu.memory_space<vmem>>, vector<16x128xf32>
      tpu.vector_store %arg6[%c0_19, %c0_20], %28 {strides = array<i32>} : memref<16x128xf32, #tpu.memory_space<vmem>>, vector<16x128xf32>,
    } else {
    }
    return
  }
  func.func @transform_0(%arg0: i32, %arg1: i32, %arg2: i32) -> (i32, i32) {
    %c0_i32 = arith.constant 0 : i32
    return %arg0, %arg2 : i32, i32
  }
  func.func @transform_1(%arg0: i32, %arg1: i32, %arg2: i32) -> (i32, i32, i32) {
    %c0_i32 = arith.constant 0 : i32
    %c0_i32_0 = arith.constant 0 : i32
    return %arg1, %arg2, %c0_i32 : i32, i32, i32
  }
  func.func @transform_2(%arg0: i32, %arg1: i32, %arg2: i32) -> (i32, i32, i32) {
    %c0_i32 = arith.constant 0 : i32
    %c0_i32_0 = arith.constant 0 : i32
    %c0_i32_1 = arith.constant 0 : i32
    return %arg1, %c0_i32, %c0_i32_0 : i32, i32, i32
  }
  func.func @transform_3(%arg0: i32, %arg1: i32, %arg2: i32) -> (i32, i32) {
    %c0_i32 = arith.constant 0 : i32
    return %arg0, %arg1 : i32, i32
  }
}

</mosaic_0001>

<bundles_post_ra>
// kernel: tpu_custom_call.1
= control target key start
LH: loop header
LB: loop body
LE: loop exit
PB: predicated region body
PF: predicated region fallthrough
CT: control target
= control target key end

     0   :  { %8 = vsyncpa [#allocation4], 0  ;;  %s478_s0 = inlined_call_operand.hbm [shape: f32[16,128], index: 0, kind: input, shape index: {}]   ;;  %s479_s1 = inlined_call_operand.hbm [shape: f32[1,128,256], index: 1, kind: input, shape index: {}]   ;;  %s480_s2 = inlined_call_operand.hbm [shape: f32[1,1,256], index: 2, kind: input, shape index: {}]   ;;  %s481_s3 = inlined_call_operand.hbm [shape: f32[16,128], index: 3, kind: output, shape index: {}]  }
   0x1   :  { %9 = vsyncpa [#allocation7], 0 }
   0x2   :  { %10 = vsyncpa [#allocation5], 0  ;;  %s395_s12 = smov [#allocation6]   ;;  %s301_s16 = scalar_lea.hbm %s479_s1, 4096 }
   0x3   :  { %s28_s13 = sshll.u32 %s395_s12, 4  ;;  %p302_p0 = scmp.ne.s32.totalorder %s479_s1, %s301_s16  ;;  %s29_s13 = int_to_ptr.vmem [resolvable:$true] %s28_s13 }
   0x4   :  { %p305_p1 = scmp.lt.u32.totalorder %s301_s16, %s479_s1 }
   0x6   :  { %p307_p2 = pnand %p305_p1, %p302_p0 }
   0x8   :  { %310 = shalt.err (!%p307_p2)
}
   0x9   :  { %s311_s21 = scalar_lea.vmem %s29_s13, 4096  ;;  %p316_p4 = scmp.lt.s32.totalorder %s29_s13, %s29_s13 }
   0xa   :  { %p312_p3 = scmp.ne.s32.totalorder %s29_s13, %s311_s21  ;;  %p317_p5 = scmp.lt.s32.totalorder %s311_s21, %s311_s21 }
   0xc   :  { %p318_p6 = por %p317_p5, %p316_p4 }
   0xe   :  { %p319_p7 = pnand %p318_p6, %p312_p3 }
  0x10   :  { %322 = shalt.err (!%p319_p7)
}
  0x11   :  { %s396_s22 = smov 256   ;;  %s397_s23 = smov 16  }
  0x12   :  { %34 = dma.hbm_to_vmem [thread:$0]  %s479_s1, 4096, %s29_s13, [#allocation7], %s396_s22, %s396_s22, %s397_s23  }
  0x13   :  { %s398_s26 = smov [#allocation3]   ;;  %s323_s30 = scalar_lea.hbm %s478_s0, 256 }
  0x14   :  { %s16_s27 = sshll.u32 %s398_s26, 4  ;;  %p324_p8 = scmp.ne.s32.totalorder %s478_s0, %s323_s30  ;;  %s17_s27 = int_to_ptr.vmem [resolvable:$true] %s16_s27 }
  0x15   :  { %p327_p9 = scmp.lt.u32.totalorder %s323_s30, %s478_s0 }
  0x17   :  { %p329_p10 = pnand %p327_p9, %p324_p8 }
  0x19   :  { %332 = shalt.err (!%p329_p10)
}
  0x1a   :  { %s333_s8 = scalar_lea.vmem %s17_s27, 256  ;;  %p338_p12 = scmp.lt.s32.totalorder %s17_s27, %s17_s27 }
  0x1b   :  { %p334_p11 = scmp.ne.s32.totalorder %s17_s27, %s333_s8  ;;  %p339_p13 = scmp.lt.s32.totalorder %s333_s8, %s333_s8 }
  0x1d   :  { %p340_p0 = por %p339_p13, %p338_p12 }
  0x1f   :  { %p341_p1 = pnand %p340_p0, %p334_p11 }
  0x21   :  { %344 = shalt.err (!%p341_p1)
}
  0x22   :  { %s399_s1 = smov 128   ;;  %s400_s9 = smov 8  }
  0x23   :  { %22 = dma.hbm_to_vmem [thread:$0]  %s478_s0, 256, %s17_s27, [#allocation4], %s399_s1, %s399_s1, %s400_s9  }
  0x24   :  { %s401_s12 = smov [#allocation8]   ;;  %s345_s16 = scalar_lea.hbm %s480_s2, 32 }
  0x25   :  { %s41_s13 = sshll.u32 %s401_s12, 4  ;;  %p346_p2 = scmp.ne.s32.totalorder %s480_s2, %s345_s16  ;;  %s42_s13 = int_to_ptr.vmem [resolvable:$true] %s41_s13 }
  0x26   :  { %p349_p3 = scmp.lt.u32.totalorder %s345_s16, %s480_s2 }
  0x28   :  { %p351_p4 = pnand %p349_p3, %p346_p2 }
  0x2a   :  { %354 = shalt.err (!%p351_p4)
}
  0x2b   :  { %s355_s21 = scalar_lea.vmem %s42_s13, 32  ;;  %p360_p6 = scmp.lt.s32.totalorder %s42_s13, %s42_s13 }
  0x2c   :  { %p356_p5 = scmp.ne.s32.totalorder %s42_s13, %s355_s21  ;;  %p361_p7 = scmp.lt.s32.totalorder %s355_s21, %s355_s21 }
  0x2e   :  { %p362_p8 = por %p361_p7, %p360_p6 }
  0x30   :  { %p363_p9 = pnand %p362_p8, %p356_p5 }
  0x32   :  { %366 = shalt.err (!%p363_p9)
}
  0x33   :  { %44 = dma.hbm_to_vmem [thread:$0]  %s480_s2, 32, %s42_s13, [#allocation7]  }
  0x34   :  { %389 = dma.done.wait [#allocation4], 256  }
  0x35   :  { %390 = vsyncadd [#allocation4], 4294967040 }
  0x36   :  { %391 = dma.done.wait [#allocation7], 4128  }
  0x37   :  { %392 = vsyncadd [#allocation7], 4294963168  ;;  %v402_v0 = vmov 0.0   ;;  %v69_v1 = vld [vmem:[#allocation6 + $0x8] sm:$0xff]  ;;  %v71_v2 = vld [vmem:[#allocation6 + $0x18] sm:$0xff]  ;;  %v194_v51 = vlaneseq  ;;  %s403_s2 = smov [#allocation9]  }
  0x38   :  { %164 = vmatprep.mubr.f32.mxu0 %v402_v0  ;;  %170 = vmatprep.mubr.f32.mxu1 %v402_v0  ;;  %v68_v3 = vld [vmem:[#allocation6] sm:$0xff]  ;;  %v240_v4 = vpack.c.bf16 %v71_v2, %v69_v1  ;;  %v70_v5 = vld [vmem:[#allocation6 + $0x10] sm:$0xff]  ;;  %v73_v6 = vld [vmem:[#allocation6 + $0x28] sm:$0xff]  ;;  %s227_s23 = sshll.u32 %s403_s2, 4  ;;  %s228_s23 = int_to_ptr.vmem [resolvable:$true] %s227_s23 }
  0x39   :  { %v75_v7 = vld [vmem:[#allocation6 + $0x38] sm:$0xff]  ;;  %v242_v8 = vpack.c.bf16 %v70_v5, %v68_v3  ;;  %v72_v10 = vld [vmem:[#allocation6 + $0x20] sm:$0xff]  ;;  %v74_v11 = vld [vmem:[#allocation6 + $0x30] sm:$0xff]  ;;  %v195_v52 = vshrl.u32 %v194_v51, 7  ;;  %s367_s24 = scalar_lea.vmem %s228_s23, 256  ;;  %p372_p11 = scmp.lt.s32.totalorder %s228_s23, %s228_s23 }
  0x3a   :  { %v244_v9 = vpack.c.bf16 %v75_v7, %v73_v6  ;;  %v77_v12 = vld [vmem:[#allocation6 + $0x48] sm:$0xff]  ;;  %241 = vmatprep.subr.bf16.mxu0 %v240_v4  ;;  %272 = vmatprep.subr.bf16.mxu1 %v240_v4  ;;  %v79_v13 = vld [vmem:[#allocation6 + $0x58] sm:$0xff]  ;;  %v246_v14 = vpack.c.bf16 %v74_v11, %v72_v10  ;;  %v76_v16 = vld [vmem:[#allocation6 + $0x40] sm:$0xff]  ;;  %p368_p10 = scmp.ne.s32.totalorder %s228_s23, %s367_s24  ;;  %p373_p12 = scmp.lt.s32.totalorder %s367_s24, %s367_s24 }
  0x3b   :  { %243 = vmatpush1.bf16.msra.mxu0 %v242_v8  ;;  %280 = vmatpush1.bf16.msra.mxu1 %v242_v8  ;;  %v248_v15 = vpack.c.bf16 %v79_v13, %v77_v12  ;;  %v78_v17 = vld [vmem:[#allocation6 + $0x50] sm:$0xff]  ;;  %v81_v18 = vld [vmem:[#allocation6 + $0x68] sm:$0xff]  ;;  %v83_v19 = vld [vmem:[#allocation6 + $0x78] sm:$0xff]  ;;  %v200_v53 = vsub.s32 1, %v195_v52  ;;  %v196_v0 = vsub.s32 0, %v195_v52 }
  0x3c   :  { %245 = vmatprep.subr.bf16.mxu0 %v244_v9  ;;  %273 = vmatprep.subr.bf16.mxu1 %v244_v9  ;;  %v250_v20 = vpack.c.bf16 %v78_v17, %v76_v16  ;;  %v252_v21 = vpack.c.bf16 %v83_v19, %v81_v18  ;;  %v80_v22 = vld [vmem:[#allocation6 + $0x60] sm:$0xff]  ;;  %v82_v23 = vld [vmem:[#allocation6 + $0x70] sm:$0xff]  ;;  %v85_v24 = vld [vmem:[#allocation6 + $0x88] sm:$0xff]  ;;  %p374_p13 = por %p373_p12, %p372_p11 }
  0x3d   :  { %v87_v25 = vld [vmem:[#allocation6 + $0x98] sm:$0xff]  ;;  %v254_v26 = vpack.c.bf16 %v82_v23, %v80_v22  ;;  %v84_v28 = vld [vmem:[#allocation6 + $0x80] sm:$0xff]  ;;  %v86_v29 = vld [vmem:[#allocation6 + $0x90] sm:$0xff] }
  0x3e   :  { %v256_v27 = vpack.c.bf16 %v87_v25, %v85_v24  ;;  %v89_v30 = vld [vmem:[#allocation6 + $0xa8] sm:$0xff]  ;;  %v91_v31 = vld [vmem:[#allocation6 + $0xb8] sm:$0xff]  ;;  %v258_v32 = vpack.c.bf16 %v86_v29, %v84_v28  ;;  %v88_v34 = vld [vmem:[#allocation6 + $0xa0] sm:$0xff]  ;;  %p375_p0 = pnand %p374_p13, %p368_p10 }
  0x3f   :  { %247 = vmatpush1.bf16.msra.mxu0 %v246_v14  ;;  %281 = vmatpush1.bf16.msra.mxu1 %v246_v14  ;;  %v260_v33 = vpack.c.bf16 %v91_v31, %v89_v30  ;;  %v90_v35 = vld [vmem:[#allocation6 + $0xb0] sm:$0xff]  ;;  %v93_v36 = vld [vmem:[#allocation6 + $0xc8] sm:$0xff]  ;;  %v95_v37 = vld [vmem:[#allocation6 + $0xd8] sm:$0xff] }
  0x40   :  { %249 = vmatprep.subr.bf16.mxu0 %v248_v15  ;;  %274 = vmatprep.subr.bf16.mxu1 %v248_v15  ;;  %v262_v38 = vpack.c.bf16 %v90_v35, %v88_v34  ;;  %v264_v39 = vpack.c.bf16 %v95_v37, %v93_v36  ;;  %v92_v40 = vld [vmem:[#allocation6 + $0xc0] sm:$0xff]  ;;  %v94_v41 = vld [vmem:[#allocation6 + $0xd0] sm:$0xff]  ;;  %v97_v42 = vld [vmem:[#allocation6 + $0xe8] sm:$0xff] }
  0x41   :  { %v99_v43 = vld [vmem:[#allocation6 + $0xf8] sm:$0xff]  ;;  %v266_v44 = vpack.c.bf16 %v94_v41, %v92_v40  ;;  %v96_v46 = vld [vmem:[#allocation6 + $0xe0] sm:$0xff]  ;;  %v98_v47 = vld [vmem:[#allocation6 + $0xf0] sm:$0xff] }
  0x42   :  { %v268_v45 = vpack.c.bf16 %v99_v43, %v97_v42  ;;  %v270_v48 = vpack.c.bf16 %v98_v47, %v96_v46  ;;  %v66_v49 = vld [vmem:[#allocation3] sm:$0xff]  ;;  %v67_v50 = vld [vmem:[#allocation3 + $0x8] sm:$0xff]  ;;  %v192_v54 = vld [vmem:[#allocation8] sm:$0x3] }
  0x43   :  { %251 = vmatpush1.bf16.msra.mxu0 %v250_v20  ;;  %282 = vmatpush1.bf16.msra.mxu1 %v250_v20  ;;  %v201_v55 = vrot.slane %v192_v54, %v200_v53  ;;  %v197_v1 = vrot.slane %v192_v54, %v196_v0 }
  0x44   :  { %253 = vmatprep.subr.bf16.mxu0 %v252_v21  ;;  %275 = vmatprep.subr.bf16.mxu1 %v252_v21 }
  0x47   :  { %255 = vmatpush1.bf16.msra.mxu0 %v254_v26  ;;  %283 = vmatpush1.bf16.msra.mxu1 %v254_v26 }
  0x48   :  { %257 = vmatprep.subr.bf16.mxu0 %v256_v27  ;;  %276 = vmatprep.subr.bf16.mxu1 %v256_v27 }
  0x4b   :  { %259 = vmatpush1.bf16.msra.mxu0 %v258_v32  ;;  %284 = vmatpush1.bf16.msra.mxu1 %v258_v32 }
  0x4c   :  { %261 = vmatprep.subr.bf16.mxu0 %v260_v33  ;;  %277 = vmatprep.subr.bf16.mxu1 %v260_v33 }
  0x4f   :  { %263 = vmatpush1.bf16.msra.mxu0 %v262_v38  ;;  %285 = vmatpush1.bf16.msra.mxu1 %v262_v38 }
  0x50   :  { %265 = vmatprep.subr.bf16.mxu0 %v264_v39  ;;  %278 = vmatprep.subr.bf16.mxu1 %v264_v39 }
  0x53   :  { %267 = vmatpush1.bf16.msra.mxu0 %v266_v44  ;;  %286 = vmatpush1.bf16.msra.mxu1 %v266_v44 }
  0x54   :  { %269 = vmatprep.subr.bf16.mxu0 %v268_v45  ;;  %279 = vmatprep.subr.bf16.mxu1 %v268_v45 }
  0x57   :  { %271 = vmatpush1.bf16.msra.mxu0 %v270_v48  ;;  %287 = vmatpush1.bf16.msra.mxu1 %v270_v48 }
  0x5a   :  { %165 = vmatmul.mubr.f32.vlgmr.msra.gmra.mrb[0].mxu0 %v66_v49  ;;  %171 = vmatmul.mubr.f32.vlgmr.msra.gmra.mrb[0].mxu1 %v67_v50 }
 0x12d   :  { %v166_v56 = vpop.f32.mrb[0].mxu0  ;;  %v172_v57 = vpop.f32.mrb[0].mxu1 }
 0x12e   :  { %v168_v58 = vpop.f32.mrb[1].mxu0  ;;  %v174_v59 = vpop.f32.mrb[1].mxu1  ;;  %v204_v8 = vadd.f32 %v197_v1, %v166_v56  ;;  %v206_v10 = vadd.f32 %v197_v1, %v172_v57 }
 0x12f   :  { %v205_v60 = vadd.f32 %v201_v55, %v168_v58  ;;  %v207_v61 = vadd.f32 %v201_v55, %v174_v59 }
 0x131   :  { %v210_v62 = vmul.f32 0.70710677, %v205_v60  ;;  %v211_v63 = vmul.f32 0.70710677, %v207_v61  ;;  %v208_v4 = vmul.f32 0.5, %v205_v60  ;;  %v209_v6 = vmul.f32 0.5, %v207_v61 }
 0x133   :  { %297 = verf.f32 %v210_v62 }
 0x134   :  { %299 = verf.f32 %v211_v63 }
 0x13d   :  { %v298_v2 = vpop.eup %297 }
 0x13e   :  { %v300_v3 = vpop.eup %299  ;;  %v214_v5 = vadd.f32 1.0, %v298_v2 }
 0x13f   :  { %v215_v7 = vadd.f32 1.0, %v300_v3 }
 0x140   :  { %v216_v9 = vmul.f32 %v214_v5, %v208_v4 }
 0x141   :  { %v217_v11 = vmul.f32 %v215_v7, %v209_v6 }
 0x142   :  { %v218_v12 = vmul.f32 %v216_v9, %v204_v8 }
 0x143   :  { %v219_v13 = vmul.f32 %v217_v11, %v206_v10 }
 0x144   :  { %220 = vst [vmem:[#allocation9] sm:$0xff] %v218_v12 }
 0x145   :  { %221 = vst [vmem:[#allocation9 + $0x8] sm:$0xff] %v219_v13 }
 0x146   :  { %378 = shalt.err (!%p375_p0)
}
 0x147   :  { %s379_s27 = scalar_lea.hbm %s481_s3, 256 }
 0x148   :  { %p380_p1 = scmp.ne.s32.totalorder %s481_s3, %s379_s27  ;;  %p383_p2 = scmp.lt.u32.totalorder %s379_s27, %s481_s3 }
 0x14a   :  { %p385_p3 = pnand %p383_p2, %p380_p1 }
 0x14c   :  { %388 = shalt.err (!%p385_p3)
}
 0x14d   :  { %233 = dma.vmem_to_hbm [thread:$0]  %s228_s23, 256, %s481_s3, [#allocation5], %s399_s1, %s399_s1, %s400_s9  }
 0x14e   :  { %393 = dma.done.wait [#allocation5], 256  }
 0x14f   :  { %394 = vsyncadd [#allocation5], 4294967040 }
 0x150   :  { %237 = vsyncpa [#allocation4], 1 }
 0x151   :  { %238 = vsyncpa [#allocation7], 1 }
 0x152   :  { %239 = vsyncpa [#allocation5], 1 }

</bundles_post_ra>
